<compile_context>
chip_gen: v5e
topology: v5e:2x2
jax: 0.10.0
libtpu: 0.0.40
codegen_flags: <defaults>
</compile_context>

<pallas_src>
import functools
import math

import jax
import jax.numpy as jnp
from jax.experimental import pallas as pl
from jax.experimental.pallas import tpu as pltpu

_LANE = 128  # lane (last-dim) granule


def _round_up(x: int, m: int) -> int:
    return (x + m - 1) // m * m


def _pick_tile(dim: int, preferred: int, granule: int = _LANE) -> int:
    """Largest multiple of `granule` that divides `dim` and is <= preferred."""
    t = min(preferred, dim)
    t = max(granule, (t // granule) * granule)
    while dim % t:
        t -= granule
    return t


def _plan_node_dim(n: int, preferred: int = 512):
    """Padded size + row tile for the node dim (M of both stages, K of stage 2)."""
    n128 = _round_up(n, _LANE)
    if n128 <= preferred or n128 % preferred == 0:
        n_pad = n128
    elif n128 != n:
        # A pad pass over the N^2 adjacency is unavoidable anyway -> pad
        # straight up to the preferred tile so the grid never degrades to
        # 128-wide steps on awkward node counts.
        n_pad = _round_up(n, preferred)
    else:
        # n already 128-aligned: an extra full N^2 pad pass over A would cost
        # more HBM than the smaller tiles save, so take the largest divisor.
        n_pad = n128
    tm = _pick_tile(n_pad, preferred)
    # Megacore (v7x, 2 TCs): the out_dim axis is usually a single 128-wide
    # tile, so all cross-core parallelism comes from the row axis -> ensure
    # >= 2 row tiles whenever the problem allows it.
    if n_pad >= 2 * _LANE and n_pad // tm < 2:
        tm = _pick_tile(n_pad, n_pad // 2)
    return n_pad, tm


def _matmul_kernel(a_ref, b_ref, o_ref, *, rhs_resident):
    """One (i, j, kk) grid step of  O[i, j] += A[i, kk] @ B[kk, j].

    The f32 output block is the accumulator: its block index is invariant in
    kk, so it stays resident in VMEM across the whole K loop (no scratch).
    Inputs are cast to bf16 right before the MXU dot, so HBM/VMEM carry the
    caller's dtype and the cast hides under the A-tile DMA.
    """
    kk = pl.program_id(2)

    @pl.when(kk == 0)
    def _init():
        o_ref[...] = jnp.zeros_like(o_ref)

    a_blk = a_ref[...].astype(jnp.bfloat16)
    if rhs_resident:
        # B was loaded as one full-K block (index (0, j)); slice the current
        # K window out of the resident copy instead of re-DMA-ing per row tile.
        tk = a_ref.shape[1]
        k0 = pl.multiple_of(kk * tk, tk)
        b_blk = b_ref[pl.ds(k0, tk), :]
    else:
        b_blk = b_ref[...]

    o_ref[...] += jnp.dot(a_blk, b_blk.astype(jnp.bfloat16),
                          preferred_element_type=jnp.float32)


def _mxu_matmul(a, b, *, tm, tn, tk, rhs_resident=True):
    """a: [M, K] @ b: [K, N] -> f32 [M, N]. Caller guarantees tile divisibility."""
    m, k = a.shape
    k2, n = b.shape
    assert k == k2 and m % tm == 0 and n % tn == 0 and k % tk == 0

    if rhs_resident:
        b_spec = pl.BlockSpec((k, tn), lambda i, j, kk: (0, j))
        b_bytes = k * tn * b.dtype.itemsize
    else:
        b_spec = pl.BlockSpec((tk, tn), lambda i, j, kk: (kk, j))
        b_bytes = tk * tn * b.dtype.itemsize

    # Double-buffered A tile + RHS + resident f32 output block + headroom for
    # compiler-internal scratch. Clamp to 48 MiB: above v5e's 16 MiB scoped
    # default, comfortably under v7x's 64 MiB physical VMEM.
    est = 2 * (tm * tk * a.dtype.itemsize + b_bytes + tm * tn * 4) + (4 << 20)
    vmem_limit = min(max(est, 32 << 20), 48 << 20)

    return pl.pallas_call(
        functools.partial(_matmul_kernel, rhs_resident=rhs_resident),
        out_shape=jax.ShapeDtypeStruct((m, n), jnp.float32),
        grid_spec=pltpu.PrefetchScalarGridSpec(
            num_scalar_prefetch=0,
            grid=(m // tm, n // tn, k // tk),
            in_specs=[pl.BlockSpec((tm, tk), lambda i, j, kk: (i, kk)), b_spec],
            out_specs=pl.BlockSpec((tm, tn), lambda i, j, kk: (i, j)),
        ),
        compiler_params=pltpu.CompilerParams(
            # Row/col axes independent -> megacore-shardable (v7x 2 TCs);
            # K (reduction) stays sequential for the resident accumulator.
            dimension_semantics=("parallel", "parallel", "arbitrary"),
            vmem_limit_bytes=vmem_limit,
        ),
    )(a, b)


def _pad2d(x, rows, cols):
    r, c = x.shape
    if r == rows and c == cols:
        return x  # no extra HBM pass when already aligned
    return jnp.zeros((rows, cols), x.dtype).at[:r, :c].set(x)


def gnn_layer(a_adjust: jax.Array, h: jax.Array, w: jax.Array) -> jax.Array:
    """out = a_adjust @ (h @ w)  (GNNLayer.forward); f32 out, bf16 MXU math."""
    n, n2 = a_adjust.shape
    n3, in_dim = h.shape
    in_dim2, out_dim = w.shape
    assert n == n2 == n3 and in_dim == in_dim2

    n_pad, tm = _plan_node_dim(n)
    in_pad = _round_up(in_dim, _LANE)
    out_pad = _round_up(out_dim, _LANE)
    tn = _pick_tile(out_pad, 256)    # 128 today; 256 fills the v6e/v7x MXU
    tk1 = _pick_tile(in_pad, 512)    # stage-1 contraction (in_dim)
    tk2 = _pick_tile(n_pad, 1024)    # stage-2 contraction (node dim)

    a_p = _pad2d(a_adjust, n_pad, n_pad)   # usually a no-op (no cast, no pad)
    h_p = _pad2d(h, n_pad, in_pad)
    w_p = _pad2d(w, in_pad, out_pad)

    # ---- Stage 1: S = H @ W, computed exactly once; W fully VMEM-resident. --
    s = _mxu_matmul(h_p, w_p, tm=tm, tn=tn, tk=tk1, rhs_resident=True)

    # ---- Stage 2: out = A @ S. HBM-bound on A; keep S K-resident so only A
    # streams from HBM. Fall back to a tiled S only for extremely large graphs
    # where the resident copy would not fit v7x's 64 MiB VMEM.
    s_resident = 2 * n_pad * tn * 4 <= (24 << 20)
    out = _mxu_matmul(a_p, s, tm=tm, tn=tn, tk=tk2, rhs_resident=s_resident)

    if n_pad == n and out_pad == out_dim:
        return out
    return out[:n, :out_dim]


def xavier_uniform(key, in_dim: int, out_dim: int) -> jax.Array:
    # Matches torch.nn.init.xavier_uniform_ for a [in_dim, out_dim] matrix.
    bound = math.sqrt(6.0 / (in_dim + out_dim))
    return jax.random.uniform(
        key, (in_dim, out_dim), jnp.float32, minval=-bound, maxval=bound
    )


if __name__ == "__main__":
    key = jax.random.PRNGKey(0)
    k_a, k_h, k_w = jax.random.split(key, 3)

    # Small but multi-tile: 256 nodes, 96 -> 32 features. in/out dims get
    # padded to 128; the node dim spans 2 row tiles so the grid, resident-S
    # slicing and output-block accumulation paths are actually exercised.
    N, IN_DIM, OUT_DIM = 256, 96, 32

    a_adjust = jax.random.uniform(k_a, (N, N), dtype=jnp.float32)
    h = jax.random.normal(k_h, (N, IN_DIM), dtype=jnp.float32)
    w = xavier_uniform(k_w, IN_DIM, OUT_DIM)

    out = jax.jit(gnn_layer)(a_adjust, h, w)
    jax.block_until_ready(out)
    assert out.shape == (N, OUT_DIM)

    # Reference mimicking the kernel's rounding: bf16 at each MXU dot, f32
    # accumulation, f32 S in between.
    f32 = jnp.float32
    h_bf = h.astype(jnp.bfloat16).astype(f32)
    w_bf = w.astype(jnp.bfloat16).astype(f32)
    s_ref = h_bf @ w_bf
    a_bf = a_adjust.astype(jnp.bfloat16).astype(f32)
    ref = a_bf @ s_ref.astype(jnp.bfloat16).astype(f32)
    max_err = float(jnp.max(jnp.abs(out - ref)))
    assert jnp.allclose(out, ref, rtol=2e-2, atol=1e-1), max_err

    print("KERNEL_OK")
</pallas_src>

<mosaic_0001>
module attributes {stable_mosaic.version = 11 : i64} {
  func.func @_matmul_kernel(%arg0: i32, %arg1: i32, %arg2: i32, %arg3: memref<128x128xf32, #tpu.memory_space<vmem>>, %arg4: memref<128x128xf32, #tpu.memory_space<vmem>>, %arg5: memref<128x128xf32, #tpu.memory_space<vmem>>) attributes {dimension_semantics = [#tpu.dimension_semantics<parallel>, #tpu.dimension_semantics<parallel>, #tpu.dimension_semantics<arbitrary>], iteration_bounds = array<i64: 2, 1, 1>, scalar_prefetch = 0 : i64, scratch_operands = 0 : i64, tpu.core_type = #tpu.core_type<tc>, window_params = [{transform_indices = @transform_0, window_bounds = array<i64: 128, 128>}, {transform_indices = @transform_1, window_bounds = array<i64: 128, 128>}, {transform_indices = @transform_2, window_bounds = array<i64: 128, 128>}]} {
    %c0_i32 = arith.constant 0 : i32
    %0 = arith.cmpi eq, %arg2, %c0_i32 : i32
    %1 = arith.extui %0 : i1 to i32
    %c0_i32_0 = arith.constant 0 : i32
    %2 = arith.cmpi ne, %1, %c0_i32_0 : i32
    scf.if %2 {
      %cst_7 = arith.constant 0.000000e+00 : f32
      %14 = vector.broadcast %cst_7 : f32 to vector<128x128xf32>
      %c0_8 = arith.constant 0 : index
      %c0_9 = arith.constant 0 : index
      %15 = vector.load %arg5[%c0_8, %c0_9] : memref<128x128xf32, #tpu.memory_space<vmem>>, vector<128x128xf32>
      tpu.vector_store %arg5[%c0_8, %c0_9], %14 {strides = array<i32>} : memref<128x128xf32, #tpu.memory_space<vmem>>, vector<128x128xf32>,
    } else {
    }
    %c0 = arith.constant 0 : index
    %c0_1 = arith.constant 0 : index
    %3 = vector.load %arg3[%c0, %c0_1] : memref<128x128xf32, #tpu.memory_space<vmem>>, vector<128x128xf32>
    %4 = arith.truncf %3 : vector<128x128xf32> to vector<128x128xbf16>
    %c128_i32 = arith.constant 128 : i32
    %5 = arith.muli %arg2, %c128_i32 : i32
    %6 = tpu.assume_multiple %5, 128 : i32
    %7 = arith.index_cast %6 : i32 to index
    %c0_2 = arith.constant 0 : index
    %8 = vector.load %arg4[%7, %c0_2] : memref<128x128xf32, #tpu.memory_space<vmem>>, vector<128x128xf32>
    %c0_3 = arith.constant 0 : index
    %c0_4 = arith.constant 0 : index
    %9 = vector.load %arg5[%c0_3, %c0_4] : memref<128x128xf32, #tpu.memory_space<vmem>>, vector<128x128xf32>
    %10 = arith.truncf %8 : vector<128x128xf32> to vector<128x128xbf16>
    %cst = arith.constant dense<0.000000e+00> : vector<128x128xf32>
    %11 = tpu.matmul %4, %10, %cst {dimension_numbers = #tpu.dot_dimension_numbers<[1], [0], [0], [1], [0, 0, 1, 1], [], []>} : vector<128x128xbf16>, vector<128x128xbf16>, vector<128x128xf32> -> vector<128x128xf32>
    %12 = arith.addf %9, %11 : vector<128x128xf32>
    %c0_5 = arith.constant 0 : index
    %c0_6 = arith.constant 0 : index
    %13 = vector.load %arg5[%c0_5, %c0_6] : memref<128x128xf32, #tpu.memory_space<vmem>>, vector<128x128xf32>
    tpu.vector_store %arg5[%c0_5, %c0_6], %12 {strides = array<i32>} : memref<128x128xf32, #tpu.memory_space<vmem>>, vector<128x128xf32>,
    return
  }
  func.func @transform_0(%arg0: i32, %arg1: i32, %arg2: i32) -> (i32, i32) {
    %c0_i32 = arith.constant 0 : i32
    return %arg0, %arg2 : i32, i32
  }
  func.func @transform_1(%arg0: i32, %arg1: i32, %arg2: i32) -> (i32, i32) {
    %c0_i32 = arith.constant 0 : i32
    %c0_i32_0 = arith.constant 0 : i32
    return %c0_i32, %arg1 : i32, i32
  }
  func.func @transform_2(%arg0: i32, %arg1: i32, %arg2: i32) -> (i32, i32) {
    %c0_i32 = arith.constant 0 : i32
    return %arg0, %arg1 : i32, i32
  }
}

module attributes {stable_mosaic.version = 11 : i64} {
  func.func @_matmul_kernel(%arg0: i32, %arg1: i32, %arg2: i32, %arg3: memref<128x256xf32, #tpu.memory_space<vmem>>, %arg4: memref<256x128xf32, #tpu.memory_space<vmem>>, %arg5: memref<128x128xf32, #tpu.memory_space<vmem>>) attributes {dimension_semantics = [#tpu.dimension_semantics<parallel>, #tpu.dimension_semantics<parallel>, #tpu.dimension_semantics<arbitrary>], iteration_bounds = array<i64: 2, 1, 1>, scalar_prefetch = 0 : i64, scratch_operands = 0 : i64, tpu.core_type = #tpu.core_type<tc>, window_params = [{transform_indices = @transform_0, window_bounds = array<i64: 128, 256>}, {transform_indices = @transform_1, window_bounds = array<i64: 256, 128>}, {transform_indices = @transform_2, window_bounds = array<i64: 128, 128>}]} {
    %c0_i32 = arith.constant 0 : i32
    %0 = arith.cmpi eq, %arg2, %c0_i32 : i32
    %1 = arith.extui %0 : i1 to i32
    %c0_i32_0 = arith.constant 0 : i32
    %2 = arith.cmpi ne, %1, %c0_i32_0 : i32
    scf.if %2 {
      %cst_7 = arith.constant 0.000000e+00 : f32
      %14 = vector.broadcast %cst_7 : f32 to vector<128x128xf32>
      %c0_8 = arith.constant 0 : index
      %c0_9 = arith.constant 0 : index
      %15 = vector.load %arg5[%c0_8, %c0_9] : memref<128x128xf32, #tpu.memory_space<vmem>>, vector<128x128xf32>
      tpu.vector_store %arg5[%c0_8, %c0_9], %14 {strides = array<i32>} : memref<128x128xf32, #tpu.memory_space<vmem>>, vector<128x128xf32>,
    } else {
    }
    %c0 = arith.constant 0 : index
    %c0_1 = arith.constant 0 : index
    %3 = vector.load %arg3[%c0, %c0_1] : memref<128x256xf32, #tpu.memory_space<vmem>>, vector<128x256xf32>
    %4 = arith.truncf %3 : vector<128x256xf32> to vector<128x256xbf16>
    %c256_i32 = arith.constant 256 : i32
    %5 = arith.muli %arg2, %c256_i32 : i32
    %6 = tpu.assume_multiple %5, 256 : i32
    %7 = arith.index_cast %6 : i32 to index
    %c0_2 = arith.constant 0 : index
    %8 = vector.load %arg4[%7, %c0_2] : memref<256x128xf32, #tpu.memory_space<vmem>>, vector<256x128xf32>
    %c0_3 = arith.constant 0 : index
    %c0_4 = arith.constant 0 : index
    %9 = vector.load %arg5[%c0_3, %c0_4] : memref<128x128xf32, #tpu.memory_space<vmem>>, vector<128x128xf32>
    %10 = arith.truncf %8 : vector<256x128xf32> to vector<256x128xbf16>
    %cst = arith.constant dense<0.000000e+00> : vector<128x128xf32>
    %11 = tpu.matmul %4, %10, %cst {dimension_numbers = #tpu.dot_dimension_numbers<[1], [0], [0], [1], [0, 0, 1, 1], [], []>} : vector<128x256xbf16>, vector<256x128xbf16>, vector<128x128xf32> -> vector<128x128xf32>
    %12 = arith.addf %9, %11 : vector<128x128xf32>
    %c0_5 = arith.constant 0 : index
    %c0_6 = arith.constant 0 : index
    %13 = vector.load %arg5[%c0_5, %c0_6] : memref<128x128xf32, #tpu.memory_space<vmem>>, vector<128x128xf32>
    tpu.vector_store %arg5[%c0_5, %c0_6], %12 {strides = array<i32>} : memref<128x128xf32, #tpu.memory_space<vmem>>, vector<128x128xf32>,
    return
  }
  func.func @transform_0(%arg0: i32, %arg1: i32, %arg2: i32) -> (i32, i32) {
    %c0_i32 = arith.constant 0 : i32
    return %arg0, %arg2 : i32, i32
  }
  func.func @transform_1(%arg0: i32, %arg1: i32, %arg2: i32) -> (i32, i32) {
    %c0_i32 = arith.constant 0 : i32
    %c0_i32_0 = arith.constant 0 : i32
    return %c0_i32, %arg1 : i32, i32
  }
  func.func @transform_2(%arg0: i32, %arg1: i32, %arg2: i32) -> (i32, i32) {
    %c0_i32 = arith.constant 0 : i32
    return %arg0, %arg1 : i32, i32
  }
}

</mosaic_0001>

<bundles_post_ra>
// kernel: gnn_layer.2
= control target key start
LH: loop header
LB: loop body
LE: loop exit
PB: predicated region body
PF: predicated region fallthrough
CT: control target
= control target key end

     0   :  { %s567_s9 = smov 0   ;;  %s569_s10 = smov 0   ;;  %s694_s0 = inlined_call_operand.vmem [shape: f32[256,128], index: 0, kind: input, shape index: {}]   ;;  %s695_s1 = inlined_call_operand.vmem [shape: f32[128,128], index: 1, kind: input, shape index: {}]   ;;  %s696_s2 = inlined_call_operand.vmem [shape: f32[256,128], index: 2, kind: output, shape index: {}]  }
   0x1   :  { %s571_s11 = smov 0  }
   0x2 LB: > { %s31_s12 = sadd.s32 1, %s546_s10  ;;  %p472_p0 = scmp.ge.s32.totalorder %s550_s11, 1  ;;  %s550_s11 = sphi %s571_s11, %s12_s11   ;;  %s546_s10 = sphi %s569_s10, %s698_s10   ;;  %s542_s9 = sphi %s567_s9, %s697_s9  }
   0x3   : > { %p33_p1 = scmp.ge.s32.totalorder %s31_s12, 2  ;;  %p148_p2 = scmp.lt.s32.totalorder %s550_s11, 3 }
   0x5   : > { %s700_s12 = smov (%p33_p1, %s31_s12), 0  ;;  %p149_p3 = pnand %p472_p0, %p148_p2 }
   0x6   : > { %s473_s29 = sshll.u32 (!%p149_p3), %s542_s9, 4 }
   0x7   : > { %152 = sbr.rel (%p149_p3) target bundleno = 205 (0xcd), region = 28  ;;  %p181_p4 = scmp.lt.s32.totalorder (!%p149_p3), %s473_s29, 31 }
   0xc   : > { %v262_v0 = vld [vmem:[%s695_s1 + $0x70] sm:$0xff]  ;;  %v263_v1 = vld [vmem:[%s695_s1 + $0x78] sm:$0xff]  ;;  %v260_v2 = vld [vmem:[%s695_s1 + $0x60] sm:$0xff]  ;;  %s702_s29 = smov (!%p181_p4, %s473_s29), 31 }
   0xd   : > { %v287_v3 = vpack.c.bf16 %v263_v1, %v262_v0  ;;  %v261_v4 = vld [vmem:[%s695_s1 + $0x68] sm:$0xff]  ;;  %v258_v6 = vld [vmem:[%s695_s1 + $0x50] sm:$0xff]  ;;  %v259_v7 = vld [vmem:[%s695_s1 + $0x58] sm:$0xff]  ;;  %s474_s17 = sshll.u32 %s702_s29, 3 }
   0xe   : > { %v286_v5 = vpack.c.bf16 %v261_v4, %v260_v2  ;;  %v285_v8 = vpack.c.bf16 %v259_v7, %v258_v6  ;;  %v256_v9 = vld [vmem:[%s695_s1 + $0x40] sm:$0xff]  ;;  %v257_v10 = vld [vmem:[%s695_s1 + $0x48] sm:$0xff]  ;;  %v254_v12 = vld [vmem:[%s695_s1 + $0x30] sm:$0xff]  ;;  %s638_s20 = scalar_lea.vmem %s694_s0, %s474_s17  ;;  %s667_s27 = scalar_lea.vmem %s696_s2, %s474_s17 }
   0xf   : > { %288 = vmatpush.bf16.msra.mxu0 %v287_v3  ;;  %479 = vmatpush.bf16.msra.mxu1 %v287_v3  ;;  %v284_v11 = vpack.c.bf16 %v257_v10, %v256_v9  ;;  %v255_v13 = vld [vmem:[%s695_s1 + $0x38] sm:$0xff]  ;;  %v252_v15 = vld [vmem:[%s695_s1 + $0x20] sm:$0xff]  ;;  %v253_v16 = vld [vmem:[%s695_s1 + $0x28] sm:$0xff] }
  0x10   : > { %480 = vmatpush.bf16.msra.mxu2 %v287_v3  ;;  %481 = vmatpush.bf16.msra.mxu3 %v287_v3  ;;  %v283_v14 = vpack.c.bf16 %v255_v13, %v254_v12  ;;  %v282_v17 = vpack.c.bf16 %v253_v16, %v252_v15  ;;  %v250_v18 = vld [vmem:[%s695_s1 + $0x10] sm:$0xff]  ;;  %v251_v19 = vld [vmem:[%s695_s1 + $0x18] sm:$0xff]  ;;  %v248_v21 = vld [vmem:[%s695_s1] sm:$0xff] }
  0x11   : > { %v281_v20 = vpack.c.bf16 %v251_v19, %v250_v18  ;;  %v249_v22 = vld [vmem:[%s695_s1 + $0x8] sm:$0xff]  ;;  %v222_v23 = vld [vmem:[%s638_s20] sm:$0xff]  ;;  %v224_v36 = vld [vmem:[%s638_s20 + $0x10] sm:$0xff] }
  0x12   : > { %v223_v24 = vld [vmem:[%s638_s20 + $0x8] sm:$0xff]  ;;  %v280_v25 = vpack.c.bf16 %v249_v22, %v248_v21  ;;  %v226_v26 = vld [vmem:[%s638_s20 + $0x20] sm:$0xff]  ;;  %v225_v37 = vld [vmem:[%s638_s20 + $0x18] sm:$0xff] }
  0x13   : > { %289 = vmatpush.bf16.msra.mxu0 %v286_v5  ;;  %482 = vmatpush.bf16.msra.mxu1 %v286_v5  ;;  %v227_v27 = vld [vmem:[%s638_s20 + $0x28] sm:$0xff]  ;;  %v230_v28 = vld [vmem:[%s638_s20 + $0x40] sm:$0xff]  ;;  %v238_v32 = vpack.c.bf16 %v223_v24, %v222_v23  ;;  %v228_v38 = vld [vmem:[%s638_s20 + $0x30] sm:$0xff]  ;;  %v239_v44 = vpack.c.bf16 %v225_v37, %v224_v36 }
  0x14   : > { %483 = vmatpush.bf16.msra.mxu2 %v286_v5  ;;  %484 = vmatpush.bf16.msra.mxu3 %v286_v5  ;;  %v231_v29 = vld [vmem:[%s638_s20 + $0x48] sm:$0xff]  ;;  %v234_v30 = vld [vmem:[%s638_s20 + $0x60] sm:$0xff]  ;;  %v240_v33 = vpack.c.bf16 %v227_v27, %v226_v26  ;;  %v229_v39 = vld [vmem:[%s638_s20 + $0x38] sm:$0xff] }
  0x15   : > { %v235_v31 = vld [vmem:[%s638_s20 + $0x68] sm:$0xff]  ;;  %v242_v34 = vpack.c.bf16 %v231_v29, %v230_v28  ;;  %v232_v40 = vld [vmem:[%s638_s20 + $0x50] sm:$0xff]  ;;  %v233_v41 = vld [vmem:[%s638_s20 + $0x58] sm:$0xff]  ;;  %v241_v45 = vpack.c.bf16 %v229_v39, %v228_v38 }
  0x16   : > { %v244_v35 = vpack.c.bf16 %v235_v31, %v234_v30  ;;  %v236_v42 = vld [vmem:[%s638_s20 + $0x70] sm:$0xff]  ;;  %v237_v43 = vld [vmem:[%s638_s20 + $0x78] sm:$0xff]  ;;  %v243_v46 = vpack.c.bf16 %v233_v41, %v232_v40 }
  0x17   : > { %290 = vmatpush.bf16.msra.mxu0 %v285_v8  ;;  %485 = vmatpush.bf16.msra.mxu1 %v285_v8  ;;  %v245_v47 = vpack.c.bf16 %v237_v43, %v236_v42 }
  0x18   : > { %486 = vmatpush.bf16.msra.mxu2 %v285_v8  ;;  %487 = vmatpush.bf16.msra.mxu3 %v285_v8 }
  0x1b   : > { %291 = vmatpush.bf16.msra.mxu0 %v284_v11  ;;  %488 = vmatpush.bf16.msra.mxu1 %v284_v11 }
  0x1c   : > { %489 = vmatpush.bf16.msra.mxu2 %v284_v11  ;;  %490 = vmatpush.bf16.msra.mxu3 %v284_v11 }
  0x1f   : > { %292 = vmatpush.bf16.msra.mxu0 %v283_v14  ;;  %491 = vmatpush.bf16.msra.mxu1 %v283_v14 }
  0x20   : > { %492 = vmatpush.bf16.msra.mxu2 %v283_v14  ;;  %493 = vmatpush.bf16.msra.mxu3 %v283_v14 }
  0x23   : > { %293 = vmatpush.bf16.msra.mxu0 %v282_v17  ;;  %494 = vmatpush.bf16.msra.mxu1 %v282_v17 }
  0x24   : > { %495 = vmatpush.bf16.msra.mxu2 %v282_v17  ;;  %496 = vmatpush.bf16.msra.mxu3 %v282_v17 }
  0x27   : > { %294 = vmatpush.bf16.msra.mxu0 %v281_v20  ;;  %497 = vmatpush.bf16.msra.mxu1 %v281_v20 }
  0x28   : > { %498 = vmatpush.bf16.msra.mxu2 %v281_v20  ;;  %499 = vmatpush.bf16.msra.mxu3 %v281_v20 }
  0x2b   : > { %295 = vmatpush.bf16.msra.mxu0 %v280_v25  ;;  %500 = vmatpush.bf16.msra.mxu1 %v280_v25 }
  0x2c   : > { %501 = vmatpush.bf16.msra.mxu2 %v280_v25  ;;  %502 = vmatpush.bf16.msra.mxu3 %v280_v25 }
  0x2e   : > { %296 = vmatmul.bf16.vlgmr.msra.gmra.mxu0 %v238_v32  ;;  %306 = vmatmul.bf16.vlgmr.msra.gmra.mxu1 %v240_v33 }
  0x2f   : > { %316 = vmatmul.bf16.vlgmr.msra.gmra.mxu2 %v242_v34  ;;  %326 = vmatmul.bf16.vlgmr.msra.gmra.mxu3 %v244_v35 }
  0x3e   : > { %301 = vmatmul.bf16.gmra.mxu0 %v239_v44  ;;  %311 = vmatmul.bf16.gmra.mxu1 %v241_v45 }
  0x3f   : > { %321 = vmatmul.bf16.gmra.mxu2 %v243_v46  ;;  %331 = vmatmul.bf16.gmra.mxu3 %v245_v47 }
  0xab   : > { %v297_v48 = vpop.f32.mrf.mxu0  ;;  %v307_v49 = vpop.f32.mrf.mxu1 }
  0xac   : > { %353 = vst [vmem:[%s667_s27] sm:$0xff] %v297_v48 }
  0xad   : > { %357 = vst [vmem:[%s667_s27 + $0x20] sm:$0xff] %v307_v49 }
  0xb2   : > { %v317_v50 = vpop.f32.mrf.mxu2  ;;  %v327_v51 = vpop.f32.mrf.mxu3 }
  0xb3   : > { %v299_v52 = vpop.f32.mrf.mxu0  ;;  %v309_v53 = vpop.f32.mrf.mxu1  ;;  %361 = vst [vmem:[%s667_s27 + $0x40] sm:$0xff] %v317_v50 }
  0xb4   : > { %365 = vst [vmem:[%s667_s27 + $0x60] sm:$0xff] %v327_v51 }
  0xb5   : > { %354 = vst [vmem:[%s667_s27 + $0x8] sm:$0xff] %v299_v52 }
  0xb6   : > { %358 = vst [vmem:[%s667_s27 + $0x28] sm:$0xff] %v309_v53 }
  0xba   : > { %v319_v54 = vpop.f32.mrf.mxu2  ;;  %v329_v55 = vpop.f32.mrf.mxu3 }
  0xbb   : > { %v302_v56 = vpop.f32.mrf.mxu0  ;;  %v312_v57 = vpop.f32.mrf.mxu1  ;;  %362 = vst [vmem:[%s667_s27 + $0x48] sm:$0xff] %v319_v54 }
  0xbc   : > { %366 = vst [vmem:[%s667_s27 + $0x68] sm:$0xff] %v329_v55 }
  0xbd   : > { %355 = vst [vmem:[%s667_s27 + $0x10] sm:$0xff] %v302_v56 }
  0xbe   : > { %359 = vst [vmem:[%s667_s27 + $0x30] sm:$0xff] %v312_v57 }
  0xc2   : > { %v322_v58 = vpop.f32.mrf.mxu2  ;;  %v332_v59 = vpop.f32.mrf.mxu3 }
  0xc3   : > { %v304_v60 = vpop.f32.mrf.mxu0  ;;  %v314_v61 = vpop.f32.mrf.mxu1  ;;  %363 = vst [vmem:[%s667_s27 + $0x50] sm:$0xff] %v322_v58 }
  0xc4   : > { %367 = vst [vmem:[%s667_s27 + $0x70] sm:$0xff] %v332_v59 }
  0xc5   : > { %356 = vst [vmem:[%s667_s27 + $0x18] sm:$0xff] %v304_v60 }
  0xc6   : > { %360 = vst [vmem:[%s667_s27 + $0x38] sm:$0xff] %v314_v61 }
  0xca   : > { %v324_v62 = vpop.f32.mrf.mxu2  ;;  %v334_v63 = vpop.f32.mrf.mxu3 }
  0xcb   : > { %364 = vst [vmem:[%s667_s27 + $0x58] sm:$0xff] %v324_v62 }
  0xcc   : > { %368 = vst [vmem:[%s667_s27 + $0x78] sm:$0xff] %v334_v63 }
  0xcd PF: > { %s12_s11 = sadd.s32 1, %s550_s11   ;;  %s697_s9 = smov %s546_s10 }
  0xce   : > { %p9_p5 = scmp.ge.s32.totalorder %s12_s11, 4   ;;  %s698_s10 = smov %s700_s12 }
  0xd0   :  { %11 = sbr.rel (!%p9_p5) target bundleno = 2 (0x2), region = 66 }

// kernel: gnn_layer.3
= control target key start
LH: loop header
LB: loop body
LE: loop exit
PB: predicated region body
PF: predicated region fallthrough
CT: control target
= control target key end

     0   :  { %s669_s9 = smov 0   ;;  %s671_s10 = smov 0   ;;  %s857_s0 = inlined_call_operand.vmem [shape: f32[256,256], index: 0, kind: input, shape index: {}]   ;;  %s858_s1 = inlined_call_operand.vmem [shape: f32[256,128], index: 1, kind: input, shape index: {}]   ;;  %s859_s2 = inlined_call_operand.vmem [shape: f32[256,128], index: 2, kind: output, shape index: {}]  }
   0x1   :  { %s673_s11 = smov 0  }
   0x2 LB: > { %s31_s12 = sadd.s32 1, %s648_s10  ;;  %p580_p0 = scmp.ge.s32.totalorder %s652_s11, 1  ;;  %s652_s11 = sphi %s673_s11, %s12_s11   ;;  %s648_s10 = sphi %s671_s10, %s861_s10   ;;  %s644_s9 = sphi %s669_s9, %s860_s9  }
   0x3   : > { %p33_p1 = scmp.ge.s32.totalorder %s31_s12, 2  ;;  %p151_p2 = scmp.lt.s32.totalorder %s652_s11, 3 }
   0x5   : > { %s863_s12 = smov (%p33_p1, %s31_s12), 0  ;;  %p152_p3 = pnand %p580_p0, %p151_p2 }
   0x6   : > { %s581_s21 = sshll.u32 (!%p152_p3), %s644_s9, 4 }
   0x7   : > { %155 = sbr.rel (%p152_p3) target bundleno = 238 (0xee), region = 28  ;;  %p187_p4 = scmp.lt.s32.totalorder (!%p152_p3), %s581_s21, 31 }
   0xc   : > { %v294_v0 = vld [vmem:[%s858_s1 + $0x70] sm:$0xff]  ;;  %v295_v1 = vld [vmem:[%s858_s1 + $0x78] sm:$0xff]  ;;  %v292_v5 = vld [vmem:[%s858_s1 + $0x60] sm:$0xff]  ;;  %s865_s21 = smov (!%p187_p4, %s581_s21), 31 }
   0xd   : > { %v310_v2 = vld [vmem:[%s858_s1 + $0xf0] sm:$0xff]  ;;  %v335_v3 = vpack.c.bf16 %v295_v1, %v294_v0  ;;  %v311_v4 = vld [vmem:[%s858_s1 + $0xf8] sm:$0xff]  ;;  %v293_v6 = vld [vmem:[%s858_s1 + $0x68] sm:$0xff]  ;;  %s588_s17 = sshll.u32 %s865_s21, 4  ;;  %s585_s5 = sshll.u32 %s865_s21, 3 }
   0xe   : > { %v343_v7 = vpack.c.bf16 %v311_v4, %v310_v2  ;;  %v308_v8 = vld [vmem:[%s858_s1 + $0xe0] sm:$0xff]  ;;  %v309_v9 = vld [vmem:[%s858_s1 + $0xe8] sm:$0xff]  ;;  %v334_v10 = vpack.c.bf16 %v293_v6, %v292_v5  ;;  %v290_v12 = vld [vmem:[%s858_s1 + $0x50] sm:$0xff]  ;;  %s780_s25 = scalar_lea.vmem %s857_s0, %s588_s17  ;;  %s830_s8 = scalar_lea.vmem %s859_s2, %s585_s5 }
   0xf   : > { %344 = vmatpush.bf16.msra.mxu0 %v335_v3  ;;  %589 = vmatpush.bf16.msra.mxu2 %v335_v3  ;;  %v342_v11 = vpack.c.bf16 %v309_v9, %v308_v8  ;;  %v291_v13 = vld [vmem:[%s858_s1 + $0x58] sm:$0xff]  ;;  %v306_v14 = vld [vmem:[%s858_s1 + $0xd0] sm:$0xff]  ;;  %v288_v18 = vld [vmem:[%s858_s1 + $0x40] sm:$0xff] }
  0x10   : > { %393 = vmatpush.bf16.msra.mxu1 %v343_v7  ;;  %597 = vmatpush.bf16.msra.mxu3 %v343_v7  ;;  %v307_v15 = vld [vmem:[%s858_s1 + $0xd8] sm:$0xff]  ;;  %v333_v16 = vpack.c.bf16 %v291_v13, %v290_v12  ;;  %v289_v19 = vld [vmem:[%s858_s1 + $0x48] sm:$0xff]  ;;  %v304_v20 = vld [vmem:[%s858_s1 + $0xc0] sm:$0xff] }
  0x11   : > { %v341_v17 = vpack.c.bf16 %v307_v15, %v306_v14  ;;  %v305_v21 = vld [vmem:[%s858_s1 + $0xc8] sm:$0xff]  ;;  %v332_v22 = vpack.c.bf16 %v289_v19, %v288_v18  ;;  %v286_v24 = vld [vmem:[%s858_s1 + $0x30] sm:$0xff]  ;;  %v287_v25 = vld [vmem:[%s858_s1 + $0x38] sm:$0xff] }
  0x12   : > { %v340_v23 = vpack.c.bf16 %v305_v21, %v304_v20  ;;  %v302_v26 = vld [vmem:[%s858_s1 + $0xb0] sm:$0xff]  ;;  %v303_v27 = vld [vmem:[%s858_s1 + $0xb8] sm:$0xff]  ;;  %v331_v28 = vpack.c.bf16 %v287_v25, %v286_v24  ;;  %v284_v30 = vld [vmem:[%s858_s1 + $0x20] sm:$0xff] }
  0x13   : > { %345 = vmatpush.bf16.msra.mxu0 %v334_v10  ;;  %590 = vmatpush.bf16.msra.mxu2 %v334_v10  ;;  %v339_v29 = vpack.c.bf16 %v303_v27, %v302_v26  ;;  %v285_v31 = vld [vmem:[%s858_s1 + $0x28] sm:$0xff]  ;;  %v300_v32 = vld [vmem:[%s858_s1 + $0xa0] sm:$0xff]  ;;  %v282_v36 = vld [vmem:[%s858_s1 + $0x10] sm:$0xff] }
  0x14   : > { %394 = vmatpush.bf16.msra.mxu1 %v342_v11  ;;  %598 = vmatpush.bf16.msra.mxu3 %v342_v11  ;;  %v301_v33 = vld [vmem:[%s858_s1 + $0xa8] sm:$0xff]  ;;  %v330_v34 = vpack.c.bf16 %v285_v31, %v284_v30  ;;  %v283_v37 = vld [vmem:[%s858_s1 + $0x18] sm:$0xff]  ;;  %v298_v38 = vld [vmem:[%s858_s1 + $0x90] sm:$0xff] }
  0x15   : > { %v338_v35 = vpack.c.bf16 %v301_v33, %v300_v32  ;;  %v299_v39 = vld [vmem:[%s858_s1 + $0x98] sm:$0xff]  ;;  %v329_v40 = vpack.c.bf16 %v283_v37, %v282_v36  ;;  %v280_v42 = vld [vmem:[%s858_s1] sm:$0xff]  ;;  %v281_v43 = vld [vmem:[%s858_s1 + $0x8] sm:$0xff] }
  0x16   : > { %v337_v41 = vpack.c.bf16 %v299_v39, %v298_v38  ;;  %v296_v44 = vld [vmem:[%s858_s1 + $0x80] sm:$0xff]  ;;  %v297_v45 = vld [vmem:[%s858_s1 + $0x88] sm:$0xff]  ;;  %v232_v47 = vld [vmem:[%s780_s25 + $0x10] sm:$0xff]  ;;  %v328_v48 = vpack.c.bf16 %v281_v43, %v280_v42 }
  0x17   : > { %346 = vmatpush.bf16.msra.mxu0 %v333_v16  ;;  %591 = vmatpush.bf16.msra.mxu2 %v333_v16  ;;  %v230_v46 = vld [vmem:[%s780_s25] sm:$0xff]  ;;  %v248_v50 = vld [vmem:[%s780_s25 + $0x90] sm:$0xff]  ;;  %v231_v51 = vld [vmem:[%s780_s25 + $0x8] sm:$0xff]  ;;  %v336_v52 = vpack.c.bf16 %v297_v45, %v296_v44 }
  0x18   : > { %395 = vmatpush.bf16.msra.mxu1 %v341_v17  ;;  %599 = vmatpush.bf16.msra.mxu3 %v341_v17  ;;  %v246_v49 = vld [vmem:[%s780_s25 + $0x80] sm:$0xff]  ;;  %v233_v53 = vld [vmem:[%s780_s25 + $0x18] sm:$0xff]  ;;  %v247_v54 = vld [vmem:[%s780_s25 + $0x88] sm:$0xff]  ;;  %v262_v56 = vpack.c.bf16 %v232_v47, %v230_v46 }
  0x19   : > { %v249_v55 = vld [vmem:[%s780_s25 + $0x98] sm:$0xff]  ;;  %v270_v57 = vpack.c.bf16 %v248_v50, %v246_v49  ;;  %v263_v58 = vpack.c.bf16 %v233_v53, %v231_v51  ;;  %v234_v60 = vld [vmem:[%s780_s25 + $0x20] sm:$0xff]  ;;  %v236_v61 = vld [vmem:[%s780_s25 + $0x30] sm:$0xff] }
  0x1a   : > { %v271_v59 = vpack.c.bf16 %v249_v55, %v247_v54  ;;  %v250_v62 = vld [vmem:[%s780_s25 + $0xa0] sm:$0xff]  ;;  %v252_v63 = vld [vmem:[%s780_s25 + $0xb0] sm:$0xff]  ;;  %v235_v0 = vld [vmem:[%s780_s25 + $0x28] sm:$0xff]  ;;  %v264_v4 = vpack.c.bf16 %v236_v61, %v234_v60 }
  0x1b   : > { %347 = vmatpush.bf16.msra.mxu0 %v332_v22  ;;  %592 = vmatpush.bf16.msra.mxu2 %v332_v22  ;;  %v237_v1 = vld [vmem:[%s780_s25 + $0x38] sm:$0xff]  ;;  %v251_v2 = vld [vmem:[%s780_s25 + $0xa8] sm:$0xff]  ;;  %v272_v5 = vpack.c.bf16 %v252_v63, %v250_v62  ;;  %v238_v8 = vld [vmem:[%s780_s25 + $0x40] sm:$0xff] }
  0x1c   : > { %396 = vmatpush.bf16.msra.mxu1 %v340_v23  ;;  %600 = vmatpush.bf16.msra.mxu3 %v340_v23  ;;  %v253_v3 = vld [vmem:[%s780_s25 + $0xb8] sm:$0xff]  ;;  %v265_v6 = vpack.c.bf16 %v237_v1, %v235_v0  ;;  %v240_v9 = vld [vmem:[%s780_s25 + $0x50] sm:$0xff]  ;;  %v254_v10 = vld [vmem:[%s780_s25 + $0xc0] sm:$0xff] }
  0x1d   : > { %v273_v7 = vpack.c.bf16 %v253_v3, %v251_v2  ;;  %v256_v11 = vld [vmem:[%s780_s25 + $0xd0] sm:$0xff]  ;;  %v239_v12 = vld [vmem:[%s780_s25 + $0x48] sm:$0xff]  ;;  %v241_v13 = vld [vmem:[%s780_s25 + $0x58] sm:$0xff]  ;;  %v266_v16 = vpack.c.bf16 %v240_v9, %v238_v8 }
  0x1e   : > { %v255_v14 = vld [vmem:[%s780_s25 + $0xc8] sm:$0xff]  ;;  %v257_v15 = vld [vmem:[%s780_s25 + $0xd8] sm:$0xff]  ;;  %v274_v17 = vpack.c.bf16 %v256_v11, %v254_v10  ;;  %v267_v18 = vpack.c.bf16 %v241_v13, %v239_v12  ;;  %v242_v20 = vld [vmem:[%s780_s25 + $0x60] sm:$0xff] }
  0x1f   : > { %348 = vmatpush.bf16.msra.mxu0 %v331_v28  ;;  %593 = vmatpush.bf16.msra.mxu2 %v331_v28  ;;  %v275_v19 = vpack.c.bf16 %v257_v15, %v255_v14  ;;  %v244_v21 = vld [vmem:[%s780_s25 + $0x70] sm:$0xff]  ;;  %v258_v22 = vld [vmem:[%s780_s25 + $0xe0] sm:$0xff]  ;;  %v243_v24 = vld [vmem:[%s780_s25 + $0x68] sm:$0xff] }
  0x20   : > { %397 = vmatpush.bf16.msra.mxu1 %v339_v29  ;;  %601 = vmatpush.bf16.msra.mxu3 %v339_v29  ;;  %v260_v23 = vld [vmem:[%s780_s25 + $0xf0] sm:$0xff]  ;;  %v245_v25 = vld [vmem:[%s780_s25 + $0x78] sm:$0xff]  ;;  %v259_v26 = vld [vmem:[%s780_s25 + $0xe8] sm:$0xff]  ;;  %v268_v28 = vpack.c.bf16 %v244_v21, %v242_v20 }
  0x21   : > { %v261_v27 = vld [vmem:[%s780_s25 + $0xf8] sm:$0xff]  ;;  %v276_v29 = vpack.c.bf16 %v260_v23, %v258_v22  ;;  %v269_v30 = vpack.c.bf16 %v245_v25, %v243_v24 }
  0x22   : > { %v277_v31 = vpack.c.bf16 %v261_v27, %v259_v26 }
  0x23   : > { %349 = vmatpush.bf16.msra.mxu0 %v330_v34  ;;  %594 = vmatpush.bf16.msra.mxu2 %v330_v34 }
  0x24   : > { %398 = vmatpush.bf16.msra.mxu1 %v338_v35  ;;  %602 = vmatpush.bf16.msra.mxu3 %v338_v35 }
  0x27   : > { %350 = vmatpush.bf16.msra.mxu0 %v329_v40  ;;  %595 = vmatpush.bf16.msra.mxu2 %v329_v40 }
  0x28   : > { %399 = vmatpush.bf16.msra.mxu1 %v337_v41  ;;  %603 = vmatpush.bf16.msra.mxu3 %v337_v41 }
  0x2b   : > { %351 = vmatpush.bf16.msra.mxu0 %v328_v48  ;;  %596 = vmatpush.bf16.msra.mxu2 %v328_v48 }
  0x2c   : > { %400 = vmatpush.bf16.msra.mxu1 %v336_v52  ;;  %604 = vmatpush.bf16.msra.mxu3 %v336_v52 }
  0x2e   : > { %352 = vmatmul.bf16.vlgmr.msra.gmra.mxu0 %v262_v56  ;;  %372 = vmatmul.bf16.vlgmr.msra.gmra.mxu2 %v270_v57 }
  0x2f   : > { %401 = vmatmul.bf16.vlgmr.msra.gmra.mxu1 %v263_v58  ;;  %421 = vmatmul.bf16.vlgmr.msra.gmra.mxu3 %v271_v59 }
  0x3e   : > { %357 = vmatmul.bf16.gmra.mxu0 %v264_v4  ;;  %377 = vmatmul.bf16.gmra.mxu2 %v272_v5 }
  0x3f   : > { %406 = vmatmul.bf16.gmra.mxu1 %v265_v6  ;;  %426 = vmatmul.bf16.gmra.mxu3 %v273_v7 }
  0x4e   : > { %362 = vmatmul.bf16.gmra.mxu0 %v266_v16  ;;  %382 = vmatmul.bf16.gmra.mxu2 %v274_v17 }
  0x4f   : > { %411 = vmatmul.bf16.gmra.mxu1 %v267_v18  ;;  %431 = vmatmul.bf16.gmra.mxu3 %v275_v19 }
  0x5e   : > { %367 = vmatmul.bf16.gmra.mxu0 %v268_v28  ;;  %387 = vmatmul.bf16.gmra.mxu2 %v276_v29 }
  0x5f   : > { %416 = vmatmul.bf16.gmra.mxu1 %v269_v30  ;;  %436 = vmatmul.bf16.gmra.mxu3 %v277_v31 }
  0xab   : > { %v353_v32 = vpop.f32.mrf.mxu0 }
  0xac   : > { %v402_v33 = vpop.f32.mrf.mxu1 }
  0xad   : > { %v403_v34 = vadd.f32 %v402_v33, %v353_v32 }
  0xaf   : > { %458 = vst [vmem:[%s830_s8] sm:$0xff] %v403_v34 }
  0xb1   : > { %v373_v35 = vpop.f32.mrf.mxu2 }
  0xb2   : > { %v422_v36 = vpop.f32.mrf.mxu3 }
  0xb3   : > { %v423_v37 = vadd.f32 %v422_v36, %v373_v35  ;;  %v355_v38 = vpop.f32.mrf.mxu0 }
  0xb4   : > { %v404_v39 = vpop.f32.mrf.mxu1 }
  0xb5   : > { %v405_v40 = vadd.f32 %v404_v39, %v355_v38  ;;  %466 = vst [vmem:[%s830_s8 + $0x40] sm:$0xff] %v423_v37 }
  0xb7   : > { %459 = vst [vmem:[%s830_s8 + $0x8] sm:$0xff] %v405_v40 }
  0xb9   : > { %v375_v41 = vpop.f32.mrf.mxu2 }
  0xba   : > { %v424_v42 = vpop.f32.mrf.mxu3 }
  0xbb   : > { %v425_v43 = vadd.f32 %v424_v42, %v375_v41  ;;  %v358_v44 = vpop.f32.mrf.mxu0 }
  0xbc   : > { %v407_v45 = vpop.f32.mrf.mxu1 }
  0xbd   : > { %v408_v46 = vadd.f32 %v407_v45, %v358_v44  ;;  %467 = vst [vmem:[%s830_s8 + $0x48] sm:$0xff] %v425_v43 }
  0xbf   : > { %460 = vst [vmem:[%s830_s8 + $0x10] sm:$0xff] %v408_v46 }
  0xc1   : > { %v378_v47 = vpop.f32.mrf.mxu2 }
  0xc2   : > { %v427_v48 = vpop.f32.mrf.mxu3 }
  0xc3   : > { %v428_v49 = vadd.f32 %v427_v48, %v378_v47  ;;  %v360_v50 = vpop.f32.mrf.mxu0 }
  0xc4   : > { %v409_v51 = vpop.f32.mrf.mxu1 }
  0xc5   : > { %v410_v52 = vadd.f32 %v409_v51, %v360_v50  ;;  %468 = vst [vmem:[%s830_s8 + $0x50] sm:$0xff] %v428_v49 }
  0xc7   : > { %461 = vst [vmem:[%s830_s8 + $0x18] sm:$0xff] %v410_v52 }
  0xc9   : > { %v380_v53 = vpop.f32.mrf.mxu2 }
  0xca   : > { %v429_v54 = vpop.f32.mrf.mxu3 }
  0xcb   : > { %v430_v55 = vadd.f32 %v429_v54, %v380_v53  ;;  %v363_v56 = vpop.f32.mrf.mxu0 }
  0xcc   : > { %v412_v57 = vpop.f32.mrf.mxu1 }
  0xcd   : > { %v413_v58 = vadd.f32 %v412_v57, %v363_v56  ;;  %469 = vst [vmem:[%s830_s8 + $0x58] sm:$0xff] %v430_v55 }
  0xcf   : > { %462 = vst [vmem:[%s830_s8 + $0x20] sm:$0xff] %v413_v58 }
  0xd1   : > { %v383_v59 = vpop.f32.mrf.mxu2 }
  0xd2   : > { %v432_v60 = vpop.f32.mrf.mxu3 }
  0xd3   : > { %v433_v61 = vadd.f32 %v432_v60, %v383_v59  ;;  %v365_v62 = vpop.f32.mrf.mxu0 }
  0xd4   : > { %v414_v63 = vpop.f32.mrf.mxu1 }
  0xd5   : > { %v415_v0 = vadd.f32 %v414_v63, %v365_v62  ;;  %470 = vst [vmem:[%s830_s8 + $0x60] sm:$0xff] %v433_v61 }
  0xd7   : > { %463 = vst [vmem:[%s830_s8 + $0x28] sm:$0xff] %v415_v0 }
  0xd9   : > { %v385_v1 = vpop.f32.mrf.mxu2 }
  0xda   : > { %v434_v2 = vpop.f32.mrf.mxu3 }
  0xdb   : > { %v435_v3 = vadd.f32 %v434_v2, %v385_v1  ;;  %v368_v4 = vpop.f32.mrf.mxu0 }
  0xdc   : > { %v417_v5 = vpop.f32.mrf.mxu1 }
  0xdd   : > { %v418_v6 = vadd.f32 %v417_v5, %v368_v4  ;;  %471 = vst [vmem:[%s830_s8 + $0x68] sm:$0xff] %v435_v3 }
  0xdf   : > { %464 = vst [vmem:[%s830_s8 + $0x30] sm:$0xff] %v418_v6 }
  0xe1   : > { %v388_v7 = vpop.f32.mrf.mxu2 }
  0xe2   : > { %v437_v8 = vpop.f32.mrf.mxu3 }
  0xe3   : > { %v438_v9 = vadd.f32 %v437_v8, %v388_v7  ;;  %v370_v10 = vpop.f32.mrf.mxu0 }
  0xe4   : > { %v419_v11 = vpop.f32.mrf.mxu1 }
  0xe5   : > { %v420_v12 = vadd.f32 %v419_v11, %v370_v10  ;;  %472 = vst [vmem:[%s830_s8 + $0x70] sm:$0xff] %v438_v9 }
  0xe7   : > { %465 = vst [vmem:[%s830_s8 + $0x38] sm:$0xff] %v420_v12 }
  0xe9   : > { %v390_v13 = vpop.f32.mrf.mxu2 }
  0xea   : > { %v439_v14 = vpop.f32.mrf.mxu3 }
  0xeb   : > { %v440_v15 = vadd.f32 %v439_v14, %v390_v13 }
  0xed   : > { %473 = vst [vmem:[%s830_s8 + $0x78] sm:$0xff] %v440_v15 }
  0xee PF: > { %s12_s11 = sadd.s32 1, %s652_s11   ;;  %s860_s9 = smov %s648_s10 }
  0xef   : > { %p9_p5 = scmp.ge.s32.totalorder %s12_s11, 4   ;;  %s861_s10 = smov %s863_s12 }
  0xf1   :  { %11 = sbr.rel (!%p9_p5) target bundleno = 2 (0x2), region = 66 }

</bundles_post_ra>
